<compile_context>
chip_gen: v6e
topology: v6e:2x2x1
jax: 0.10.0
libtpu: 0.0.40
codegen_flags: <defaults>
</compile_context>

<pallas_src>
import functools

import jax
import jax.numpy as jnp
from jax.experimental import pallas as pl
from jax.experimental.pallas import tpu as pltpu

_LANE = 128


def _round_up(n, m):
    return (n + m - 1) // m * m


def _pad2d(a, rows, cols):
    r, c = a.shape
    return jnp.pad(a, ((0, rows - r), (0, cols - c)))


def _keep_mask(shape, seed_u32):
    """Stateless Bernoulli(0.5) keep-mask from a counter hash (portable, no TPU PRNG)."""
    rows = jax.lax.broadcasted_iota(jnp.int32, shape, 0).astype(jnp.uint32)
    cols = jax.lax.broadcasted_iota(jnp.int32, shape, 1).astype(jnp.uint32)
    x = rows * jnp.uint32(0x9E3779B1) + cols * jnp.uint32(0x85EBCA77) + seed_u32
    x = x ^ (x >> 16)
    x = x * jnp.uint32(0x7FEB352D)
    x = x ^ (x >> 15)
    x = x * jnp.uint32(0x846CA68B)
    x = x ^ (x >> 16)
    return (x & jnp.uint32(0x80000000)) == 0  # top bit clear -> keep (p = 0.5)


def _gcn_fused_kernel(seed_ref, x_ref, adj_ref, mask_ref, *w_and_out,
                      layer_num, val_test):
    # seed: SMEM (1,) i32 | x:(Np,D0p) f32 | adj:(Np,Np) bf16 | mask:(Np,D1p) f32
    # w[ln]:(D_ln_p, D_ln+1_p) bf16 (pre-transposed W^T) | out:(Np,DLp) f32
    w_refs = w_and_out[:layer_num]
    o_ref = w_and_out[layer_num]

    adj = adj_ref[...]                                  # bf16, loaded once, reused
    h = x_ref[...]                                      # f32
    for ln in range(layer_num):
        if ln == 1:
            h = h * mask_ref[...]                       # feat_mask1_train * feat_mask2_fixed
        # X @ W^T on the MXU (bf16 operands, f32 accumulation)
        h = jnp.dot(h.astype(jnp.bfloat16), w_refs[ln][...],
                    preferred_element_type=jnp.float32)
        # A @ H on the MXU
        h = jnp.dot(adj, h.astype(jnp.bfloat16),
                    preferred_element_type=jnp.float32)
        if ln < layer_num - 1:
            h = jnp.maximum(h, 0.0)                     # ReLU
            if not val_test:
                # Dropout(p=0.5) with inverted scaling; per-layer seed offset.
                seed_u = (seed_ref[0].astype(jnp.uint32)
                          + jnp.uint32((ln * 0x9E3779B1) & 0xFFFFFFFF))
                keep = _keep_mask(h.shape, seed_u)
                h = jnp.where(keep, h * 2.0, 0.0)
    o_ref[...] = h.astype(o_ref.dtype)


def gcn_fused_forward(seed, x_p, adj_p, mask_p, weights_t_pad, *, val_test):
    layer_num = len(weights_t_pad)
    n_p = x_p.shape[0]
    d_out_p = weights_t_pad[-1].shape[1]
    kernel = functools.partial(_gcn_fused_kernel,
                               layer_num=layer_num, val_test=val_test)

    # Rough resident-VMEM footprint; only raise the scoped limit if it matters.
    max_dp = max(w.shape[1] for w in weights_t_pad)
    bytes_needed = (adj_p.size * adj_p.dtype.itemsize
                    + x_p.size * 4 + mask_p.size * 4
                    + sum(w.size * 2 for w in weights_t_pad)
                    + n_p * d_out_p * 4
                    + 4 * n_p * max_dp * 4)             # intermediates headroom
    compiler_params = None
    if bytes_needed > (16 << 20):
        compiler_params = pltpu.CompilerParams(
            vmem_limit_bytes=int(min(2 * bytes_needed, 100 << 20)))

    in_specs = ([pl.BlockSpec(memory_space=pltpu.MemorySpace.SMEM)]        # seed
                + [pl.BlockSpec(memory_space=pltpu.MemorySpace.VMEM)]      # x
                + [pl.BlockSpec(memory_space=pltpu.MemorySpace.VMEM)]      # adj
                + [pl.BlockSpec(memory_space=pltpu.MemorySpace.VMEM)]      # feat mask
                + [pl.BlockSpec(memory_space=pltpu.MemorySpace.VMEM)] * layer_num)

    return pl.pallas_call(
        kernel,
        out_shape=jax.ShapeDtypeStruct((n_p, d_out_p), jnp.float32),
        in_specs=in_specs,
        out_specs=pl.BlockSpec(memory_space=pltpu.MemorySpace.VMEM),
        compiler_params=compiler_params,
    )(seed, x_p, adj_p, mask_p, *weights_t_pad)


class NetGCNPallas:
    """JAX/Pallas port of net_gcn's forward pass (fused single-kernel version)."""

    def __init__(self, embedding_dim, adj_dense, key):
        self.layer_num = len(embedding_dim) - 1
        self.embedding_dim = list(embedding_dim)
        n = adj_dense.shape[0]
        self.num_nodes = n
        self.n_pad = _round_up(n, _LANE)
        self.dims_pad = [_round_up(d, _LANE) for d in embedding_dim]

        # nn.Linear(in, out, bias=False): weight (out, in); forward is x @ W^T.
        self.weights = []        # torch layout (out, in), f32 (reference)
        self.weights_t_pad = []  # padded (in_pad, out_pad), bf16 (kernel operand)
        for ln in range(self.layer_num):
            key, sub = jax.random.split(key)
            fan_in = embedding_dim[ln]
            bound = 1.0 / float(fan_in) ** 0.5
            w = jax.random.uniform(sub, (embedding_dim[ln + 1], fan_in),
                                   jnp.float32, -bound, bound)
            self.weights.append(w)
            w_t_pad = _pad2d(w.T, self.dims_pad[ln], self.dims_pad[ln + 1])
            self.weights_t_pad.append(w_t_pad.astype(jnp.bfloat16))

        # Parity with the PyTorch module (not used in the forward math).
        self.adj_mask1_train = (adj_dense != 0).astype(jnp.float32)
        self.adj_mask2_fixed = (adj_dense != 0).astype(jnp.float32)

        # generate_feat_mask: ones, shape (vertex_num, embedding_dim[1]).
        self.feat_mask1_train = jnp.ones((n, embedding_dim[1]), jnp.float32)
        self.feat_mask2_fixed = jnp.ones((n, embedding_dim[1]), jnp.float32)

        self.feats = []

    def forward(self, x, adj, val_test=False, dropout_seed=0):
        n = x.shape[0]
        # adj.type(torch.float).to_dense(); 0/1 adjacency entries are exact in bf16.
        # TODO(synk): utils.torch_normalize_adj is stored but never called in the
        # original forward(), so no adjacency normalization is applied here either.
        adj_p = _pad2d(adj.astype(jnp.float32), self.n_pad, self.n_pad)
        adj_p = adj_p.astype(jnp.bfloat16)
        x_p = _pad2d(x.astype(jnp.float32), self.n_pad, self.dims_pad[0])
        mask = self.feat_mask1_train * self.feat_mask2_fixed
        mask_p = _pad2d(mask, self.n_pad, self.dims_pad[1])
        seed = jnp.array([dropout_seed], dtype=jnp.int32)

        out_p = gcn_fused_forward(seed, x_p, adj_p, mask_p, self.weights_t_pad,
                                  val_test=val_test)
        out = out_p[:n, :self.embedding_dim[-1]]
        # TODO(synk): intermediate per-layer activations (feats[1:-1]) are not
        # materialized by the fused kernel; only input and final output are kept.
        self.feats = [x, out]
        return out


if __name__ == "__main__":
    key = jax.random.PRNGKey(0)
    k_adj, k_x, k_w = jax.random.split(key, 3)

    num_nodes = 16
    embedding_dim = [32, 16, 8]   # in-dim, hidden, classes

    # synthetic sparse-ish adjacency, densified (as forward() would do), self-loops
    adj = (jax.random.uniform(k_adj, (num_nodes, num_nodes)) < 0.2).astype(jnp.float32)
    adj = jnp.minimum(adj + jnp.eye(num_nodes, dtype=jnp.float32), 1.0)

    x = jax.random.normal(k_x, (num_nodes, embedding_dim[0]), jnp.float32)

    model = NetGCNPallas(embedding_dim, adj, k_w)

    out_eval = model.forward(x, adj, val_test=True)      # no dropout
    out_train = model.forward(x, adj, val_test=False)    # dropout (p=0.5)
    jax.block_until_ready(out_eval)
    jax.block_until_ready(out_train)

    assert out_eval.shape == (num_nodes, embedding_dim[-1])
    assert out_train.shape == (num_nodes, embedding_dim[-1])
    assert bool(jnp.all(jnp.isfinite(out_eval)))
    assert bool(jnp.all(jnp.isfinite(out_train)))

    # Pure-JAX f32 reference for the no-dropout path (tolerance covers bf16 matmuls).
    h = x
    for ln in range(model.layer_num):
        if ln == 1:
            h = h * (model.feat_mask1_train * model.feat_mask2_fixed)
        h = h @ model.weights[ln].T
        h = adj @ h
        if ln < model.layer_num - 1:
            h = jnp.maximum(h, 0.0)
    assert jnp.allclose(out_eval, h, rtol=1e-1, atol=1e-1), (
        "max abs err = %f" % float(jnp.max(jnp.abs(out_eval - h))))

    print("KERNEL_OK")
</pallas_src>

<mosaic_0001>
module attributes {stable_mosaic.version = 11 : i64} {
  func.func @_gcn_fused_kernel(%arg0: memref<1xi32, #tpu.memory_space<smem>>, %arg1: memref<128x128xf32, #tpu.memory_space<vmem>>, %arg2: memref<128x128xbf16, #tpu.memory_space<vmem>>, %arg3: memref<128x128xf32, #tpu.memory_space<vmem>>, %arg4: memref<128x128xbf16, #tpu.memory_space<vmem>>, %arg5: memref<128x128xbf16, #tpu.memory_space<vmem>>, %arg6: memref<128x128xf32, #tpu.memory_space<vmem>>) attributes {dimension_semantics = [], scalar_prefetch = 0 : i64, scratch_operands = 0 : i64, tpu.core_type = #tpu.core_type<tc>} {
    %c0 = arith.constant 0 : index
    %c0_0 = arith.constant 0 : index
    %0 = vector.load %arg2[%c0, %c0_0] : memref<128x128xbf16, #tpu.memory_space<vmem>>, vector<128x128xbf16>
    %c0_1 = arith.constant 0 : index
    %c0_2 = arith.constant 0 : index
    %1 = vector.load %arg1[%c0_1, %c0_2] : memref<128x128xf32, #tpu.memory_space<vmem>>, vector<128x128xf32>
    %2 = arith.truncf %1 : vector<128x128xf32> to vector<128x128xbf16>
    %c0_3 = arith.constant 0 : index
    %c0_4 = arith.constant 0 : index
    %3 = vector.load %arg4[%c0_3, %c0_4] : memref<128x128xbf16, #tpu.memory_space<vmem>>, vector<128x128xbf16>
    %cst = arith.constant dense<0.000000e+00> : vector<128x128xf32>
    %4 = tpu.matmul %2, %3, %cst {dimension_numbers = #tpu.dot_dimension_numbers<[1], [0], [0], [1], [0, 0, 1, 1], [], []>} : vector<128x128xbf16>, vector<128x128xbf16>, vector<128x128xf32> -> vector<128x128xf32>
    %5 = arith.truncf %4 : vector<128x128xf32> to vector<128x128xbf16>
    %cst_5 = arith.constant dense<0.000000e+00> : vector<128x128xf32>
    %6 = tpu.matmul %0, %5, %cst_5 {dimension_numbers = #tpu.dot_dimension_numbers<[1], [0], [0], [1], [0, 0, 1, 1], [], []>} : vector<128x128xbf16>, vector<128x128xbf16>, vector<128x128xf32> -> vector<128x128xf32>
    %cst_6 = arith.constant 0.000000e+00 : f32
    %7 = vector.broadcast %cst_6 : f32 to vector<128x128xf32>
    %8 = arith.maximumf %6, %7 : vector<128x128xf32>
    %c0_7 = arith.constant 0 : index
    %c0_8 = arith.constant 0 : index
    %9 = vector.load %arg3[%c0_7, %c0_8] : memref<128x128xf32, #tpu.memory_space<vmem>>, vector<128x128xf32>
    %10 = arith.mulf %8, %9 : vector<128x128xf32>
    %11 = arith.truncf %10 : vector<128x128xf32> to vector<128x128xbf16>
    %c0_9 = arith.constant 0 : index
    %c0_10 = arith.constant 0 : index
    %12 = vector.load %arg5[%c0_9, %c0_10] : memref<128x128xbf16, #tpu.memory_space<vmem>>, vector<128x128xbf16>
    %cst_11 = arith.constant dense<0.000000e+00> : vector<128x128xf32>
    %13 = tpu.matmul %11, %12, %cst_11 {dimension_numbers = #tpu.dot_dimension_numbers<[1], [0], [0], [1], [0, 0, 1, 1], [], []>} : vector<128x128xbf16>, vector<128x128xbf16>, vector<128x128xf32> -> vector<128x128xf32>
    %14 = arith.truncf %13 : vector<128x128xf32> to vector<128x128xbf16>
    %cst_12 = arith.constant dense<0.000000e+00> : vector<128x128xf32>
    %15 = tpu.matmul %0, %14, %cst_12 {dimension_numbers = #tpu.dot_dimension_numbers<[1], [0], [0], [1], [0, 0, 1, 1], [], []>} : vector<128x128xbf16>, vector<128x128xbf16>, vector<128x128xf32> -> vector<128x128xf32>
    %c0_13 = arith.constant 0 : index
    %c0_14 = arith.constant 0 : index
    %16 = vector.load %arg6[%c0_13, %c0_14] : memref<128x128xf32, #tpu.memory_space<vmem>>, vector<128x128xf32>
    tpu.vector_store %arg6[%c0_13, %c0_14], %15 {strides = array<i32>} : memref<128x128xf32, #tpu.memory_space<vmem>>, vector<128x128xf32>,
    return
  }
}

</mosaic_0001>

<bundles_post_ra>
// kernel: tpu_custom_call.1
= control target key start
LH: loop header
LB: loop body
LE: loop exit
PB: predicated region body
PF: predicated region fallthrough
CT: control target
= control target key end

     0   :  { %12 = vsyncpa [#allocation4], 0  ;;  %s1296_s0 = inlined_call_operand.<no memory space> [shape: s32[1], index: 0, kind: input, shape index: {}]   ;;  %s1297_s1 = inlined_call_operand.hbm [shape: f32[128,128], index: 1, kind: input, shape index: {}]   ;;  %s1298_s2 = inlined_call_operand.hbm [shape: bf16[128,128], index: 2, kind: input, shape index: {}]   ;;  %s1299_s3 = inlined_call_operand.hbm [shape: f32[128,128], index: 3, kind: input, shape index: {}]   ;;  %s1300_s4 = inlined_call_operand.hbm [shape: bf16[128,128], index: 4, kind: input, shape index: {}]   ;;  %s1301_s5 = inlined_call_operand.hbm [shape: bf16[128,128], index: 5, kind: input, shape index: {}]   ;;  %s1302_s6 = inlined_call_operand.hbm [shape: f32[128,128], index: 6, kind: output, shape index: {}]  }
   0x1   :  { %13 = vsyncpa [#allocation7], 0 }
   0x2   :  { %14 = vsyncpa [#allocation10], 0 }
   0x3   :  { %15 = vsyncpa [#allocation5], 0  ;;  %s1183_s0 = smov [#allocation6]  }
   0x4   :  { %s35_s21 = sshll.u32 %s1183_s0, 4  ;;  %s36_s21 = int_to_ptr.vmem [resolvable:$true] %s35_s21 }
   0x5   :  { %s1063_s22 = scalar_lea.vmem %s36_s21, 1024  ;;  %p1068_p1 = scmp.lt.s32.totalorder %s36_s21, %s36_s21 }
   0x6   :  { %p1064_p0 = scmp.ne.s32.totalorder %s36_s21, %s1063_s22  ;;  %p1069_p2 = scmp.lt.s32.totalorder %s1063_s22, %s1063_s22 }
   0x8   :  { %p1070_p3 = por %p1069_p2, %p1068_p1 }
   0xa   :  { %p1071_p4 = pnand %p1070_p3, %p1064_p0 }
   0xc   :  { %1074 = shalt.err (!%p1071_p4)
}
   0xd   :  { %s1184_s23 = smov 64   ;;  %s1185_s24 = smov 4  }
   0xe   :  { %41 = dma.hbm_to_vmem [thread:$0]  %s1298_s2, 1024, %s36_s21, [#allocation7], %s1184_s23, %s1184_s23, %s1185_s24  }
   0xf   :  { %s1186_s27 = smov [#allocation9]   ;;  %s1187_s29 = smov [#allocation3]  }
  0x10   :  { %s59_s28 = sshll.u32 %s1186_s27, 4  ;;  %s23_s30 = sshll.u32 %s1187_s29, 4  ;;  %s60_s28 = int_to_ptr.vmem [resolvable:$true] %s59_s28  ;;  %s24_s30 = int_to_ptr.vmem [resolvable:$true] %s23_s30 }
  0x11   :  { %s1083_s7 = scalar_lea.vmem %s60_s28, 1024  ;;  %p1088_p6 = scmp.lt.s32.totalorder %s60_s28, %s60_s28 }
  0x12   :  { %p1084_p5 = scmp.ne.s32.totalorder %s60_s28, %s1083_s7  ;;  %p1089_p7 = scmp.lt.s32.totalorder %s1083_s7, %s1083_s7 }
  0x14   :  { %p1090_p8 = por %p1089_p7, %p1088_p6 }
  0x16   :  { %p1091_p9 = pnand %p1090_p8, %p1084_p5 }
  0x18   :  { %1094 = shalt.err (!%p1091_p9)
}
  0x19   :  { %65 = dma.hbm_to_vmem [thread:$0]  %s1300_s4, 1024, %s60_s28, [#allocation10], %s1184_s23, %s1184_s23, %s1185_s24  }
  0x1a   :  { %s1103_s2 = scalar_lea.vmem %s24_s30, 2048  ;;  %p1108_p11 = scmp.lt.s32.totalorder %s24_s30, %s24_s30 }
  0x1b   :  { %p1104_p10 = scmp.ne.s32.totalorder %s24_s30, %s1103_s2  ;;  %p1109_p12 = scmp.lt.s32.totalorder %s1103_s2, %s1103_s2 }
  0x1d   :  { %p1110_p13 = por %p1109_p12, %p1108_p11 }
  0x1f   :  { %p1111_p0 = pnand %p1110_p13, %p1104_p10 }
  0x21   :  { %1114 = shalt.err (!%p1111_p0)
}
  0x22   :  { %s1188_s10 = smov 128   ;;  %s1189_s11 = smov 8  }
  0x23   :  { %29 = dma.hbm_to_vmem [thread:$0]  %s1297_s1, 2048, %s24_s30, [#allocation4], %s1188_s10, %s1188_s10, %s1189_s11  }
  0x24   :  { %s1190_s14 = smov [#allocation8]   ;;  %s1191_s4 = smov [#allocation11]  }
  0x25   :  { %s47_s15 = sshll.u32 %s1190_s14, 4  ;;  %s71_s16 = sshll.u32 %s1191_s4, 4  ;;  %s48_s15 = int_to_ptr.vmem [resolvable:$true] %s47_s15  ;;  %s72_s16 = int_to_ptr.vmem [resolvable:$true] %s71_s16 }
  0x26   :  { %s1123_s17 = scalar_lea.vmem %s48_s15, 2048  ;;  %p1128_p2 = scmp.lt.s32.totalorder %s48_s15, %s48_s15 }
  0x27   :  { %p1124_p1 = scmp.ne.s32.totalorder %s48_s15, %s1123_s17  ;;  %p1129_p3 = scmp.lt.s32.totalorder %s1123_s17, %s1123_s17 }
  0x29   :  { %p1130_p4 = por %p1129_p3, %p1128_p2 }
  0x2b   :  { %p1131_p5 = pnand %p1130_p4, %p1124_p1 }
  0x2d   :  { %1134 = shalt.err (!%p1131_p5)
}
  0x2e   :  { %53 = dma.hbm_to_vmem [thread:$0]  %s1299_s3, 2048, %s48_s15, [#allocation7], %s1188_s10, %s1188_s10, %s1189_s11  }
  0x2f   :  { %s1143_s1 = scalar_lea.vmem %s72_s16, 1024  ;;  %p1148_p7 = scmp.lt.s32.totalorder %s72_s16, %s72_s16 }
  0x30   :  { %p1144_p6 = scmp.ne.s32.totalorder %s72_s16, %s1143_s1  ;;  %p1149_p8 = scmp.lt.s32.totalorder %s1143_s1, %s1143_s1 }
  0x32   :  { %p1150_p9 = por %p1149_p8, %p1148_p7 }
  0x34   :  { %p1151_p10 = pnand %p1150_p9, %p1144_p6 }
  0x36   :  { %1154 = shalt.err (!%p1151_p10)
}
  0x37   :  { %77 = dma.hbm_to_vmem [thread:$0]  %s1301_s5, 1024, %s72_s16, [#allocation10], %s1184_s23, %s1184_s23, %s1185_s24  }
  0x38   :  { %1175 = dma.done.wait [#allocation4], 2048  }
  0x39   :  { %1176 = vsyncadd [#allocation4], 4294965248 }
  0x3a   :  { %1177 = dma.done.wait [#allocation7], 3072  }
  0x3b   :  { %1178 = vsyncadd [#allocation7], 4294964224 }
  0x3c   :  { %1179 = dma.done.wait [#allocation10], 2048  }
  0x3d   :  { %1180 = vsyncadd [#allocation10], 4294965248  ;;  %v1031_v0 = vld [vmem:[#allocation9 + $0x38] sm:$0xff]   ;;  %v1032_v1 = vld [vmem:[#allocation9 + $0x30] sm:$0xff]   ;;  %s1192_s3 = smov [#allocation12]  }
  0x3e   :  { %893 = vmatprep.subr.bf16.mxu0 %v1031_v0  ;;  %v1033_v2 = vld [vmem:[#allocation9 + $0x28] sm:$0xff]   ;;  %v1034_v3 = vld [vmem:[#allocation9 + $0x20] sm:$0xff]   ;;  %v1035_v7 = vld [vmem:[#allocation9 + $0x18] sm:$0xff]   ;;  %s791_s5 = sshll.u32 %s1192_s3, 4  ;;  %s792_s5 = int_to_ptr.vmem [resolvable:$true] %s791_s5 }
  0x3f   :  { %894 = vmatpush3.bf16.msra.mxu0 %v1031_v0  ;;  %v110_v4 = vld [vmem:[#allocation3] sm:$0xff]  ;;  %v111_v5 = vld [vmem:[#allocation3 + $0x8] sm:$0xff]  ;;  %v1036_v8 = vld [vmem:[#allocation9 + $0x10] sm:$0xff]   ;;  %s1155_s21 = scalar_lea.vmem %s792_s5, 2048  ;;  %p1160_p12 = scmp.lt.s32.totalorder %s792_s5, %s792_s5 }
  0x40   :  { %895 = vmatprep.subr.bf16.mxu0 %v1032_v1  ;;  %v126_v6 = vpack.c.bf16 %v111_v5, %v110_v4  ;;  %v1037_v9 = vld [vmem:[#allocation9 + $0x8] sm:$0xff]   ;;  %v1038_v10 = vld [vmem:[#allocation9] sm:$0xff]   ;;  %v112_v11 = vld [vmem:[#allocation3 + $0x10] sm:$0xff]  ;;  %p1156_p11 = scmp.ne.s32.totalorder %s792_s5, %s1155_s21  ;;  %p1161_p13 = scmp.lt.s32.totalorder %s1155_s21, %s1155_s21 }
  0x41   :  { %v113_v12 = vld [vmem:[#allocation3 + $0x18] sm:$0xff]  ;;  %v114_v13 = vld [vmem:[#allocation3 + $0x20] sm:$0xff]  ;;  %v115_v14 = vld [vmem:[#allocation3 + $0x28] sm:$0xff] }
  0x42   :  { %909 = vmatprep.mubr.bf16.mxu0 %v126_v6  ;;  %v127_v15 = vpack.c.bf16 %v113_v12, %v112_v11  ;;  %v128_v16 = vpack.c.bf16 %v115_v14, %v114_v13  ;;  %v116_v17 = vld [vmem:[#allocation3 + $0x30] sm:$0xff]  ;;  %v117_v18 = vld [vmem:[#allocation3 + $0x38] sm:$0xff]  ;;  %v118_v19 = vld [vmem:[#allocation3 + $0x40] sm:$0xff]  ;;  %p1162_p0 = por %p1161_p13, %p1160_p12 }
  0x43   :  { %896 = vmatpush3.bf16.msra.mxu0 %v1032_v1  ;;  %v119_v20 = vld [vmem:[#allocation3 + $0x48] sm:$0xff]  ;;  %v129_v21 = vpack.c.bf16 %v117_v18, %v116_v17  ;;  %v120_v23 = vld [vmem:[#allocation3 + $0x50] sm:$0xff]  ;;  %v121_v24 = vld [vmem:[#allocation3 + $0x58] sm:$0xff] }
  0x44   :  { %897 = vmatprep.subr.bf16.mxu0 %v1033_v2  ;;  %v130_v22 = vpack.c.bf16 %v119_v20, %v118_v19  ;;  %v122_v25 = vld [vmem:[#allocation3 + $0x60] sm:$0xff]  ;;  %v123_v26 = vld [vmem:[#allocation3 + $0x68] sm:$0xff]  ;;  %v131_v27 = vpack.c.bf16 %v121_v24, %v120_v23  ;;  %v124_v29 = vld [vmem:[#allocation3 + $0x70] sm:$0xff]  ;;  %p1163_p1 = pnand %p1162_p0, %p1156_p11 }
  0x45   :  { %v132_v28 = vpack.c.bf16 %v123_v26, %v122_v25  ;;  %v125_v30 = vld [vmem:[#allocation3 + $0x78] sm:$0xff]  ;;  %v1258_v32 = vld [vmem:[#allocation6] sm:$0xff]   ;;  %v1048_v34 = vld [vmem:[#allocation11 + $0x30] sm:$0xff]  }
  0x46   :  { %v133_v31 = vpack.c.bf16 %v125_v30, %v124_v29  ;;  %941 = vmatprep.mubr.bf16.mxu1 %v1258_v32  ;;  %v1047_v33 = vld [vmem:[#allocation11 + $0x38] sm:$0xff]   ;;  %v1049_v35 = vld [vmem:[#allocation11 + $0x28] sm:$0xff]   ;;  %v1050_v36 = vld [vmem:[#allocation11 + $0x20] sm:$0xff]  }
  0x47   :  { %898 = vmatpush3.bf16.msra.mxu0 %v1033_v2  ;;  %v1051_v37 = vld [vmem:[#allocation11 + $0x18] sm:$0xff]   ;;  %v1261_v62 = vld [vmem:[#allocation6 + $0x8] sm:$0xff]   ;;  %v1263_v63 = vld [vmem:[#allocation6 + $0x10] sm:$0xff]  }
  0x48   :  { %899 = vmatprep.subr.bf16.mxu0 %v1034_v3  ;;  %v1267_v0 = vld [vmem:[#allocation6 + $0x18] sm:$0xff]   ;;  %v1269_v1 = vld [vmem:[#allocation6 + $0x20] sm:$0xff]   ;;  %v1273_v2 = vld [vmem:[#allocation6 + $0x28] sm:$0xff]  }
  0x49   :  { %v1279_v4 = vld [vmem:[#allocation6 + $0x38] sm:$0xff]   ;;  %v1052_v5 = vld [vmem:[#allocation11 + $0x10] sm:$0xff]   ;;  %v1053_v6 = vld [vmem:[#allocation11 + $0x8] sm:$0xff]  }
  0x4a   :  { %v467_v13 = vld [vmem:[#allocation8 + $0x18] sm:$0xff]  ;;  %v465_v17 = vld [vmem:[#allocation8 + $0x8] sm:$0xff]  ;;  %v466_v18 = vld [vmem:[#allocation8 + $0x10] sm:$0xff] }
  0x4b   :  { %900 = vmatpush3.bf16.msra.mxu0 %v1034_v3  ;;  %v1275_v3 = vld [vmem:[#allocation6 + $0x30] sm:$0xff]  }
  0x4c   :  { %901 = vmatprep.subr.bf16.mxu0 %v1035_v7 }
  0x4f   :  { %902 = vmatpush3.bf16.msra.mxu0 %v1035_v7  ;;  %v1054_v7 = vld [vmem:[#allocation11] sm:$0xff]  }
  0x50   :  { %903 = vmatprep.subr.bf16.mxu0 %v1036_v8 }
  0x53   :  { %904 = vmatpush3.bf16.msra.mxu0 %v1036_v8 }
  0x54   :  { %905 = vmatprep.subr.bf16.mxu0 %v1037_v9 }
  0x57   :  { %906 = vmatpush3.bf16.msra.mxu0 %v1037_v9 }
  0x58   :  { %907 = vmatprep.subr.bf16.mxu0 %v1038_v10 }
  0x5b   :  { %908 = vmatpush3.bf16.msra.mxu0 %v1038_v10 }
  0x5c   :  { %957 = vmatprep.subr.bf16.mxu0 %v1047_v33 }
  0x5e   :  { %910 = vmatmul.mubr.bf16.vlgmr.msra.gmra.mxu0 %v127_v15  ;;  %v464_v15 = vld [vmem:[#allocation8] sm:$0xff] }
  0x5f   :  { %913 = vmatprep.mubr.bf16.mxu0 %v128_v16  ;;  %958 = vmatpush3.bf16.msra.mxu0 %v1047_v33  ;;  %v468_v33 = vld [vmem:[#allocation8 + $0x20] sm:$0xff] }
  0x60   :  { %959 = vmatprep.subr.bf16.mxu0 %v1048_v34 }
  0x63   :  { %960 = vmatpush3.bf16.msra.mxu0 %v1048_v34 }
  0x64   :  { %961 = vmatprep.subr.bf16.mxu0 %v1049_v35 }
  0x66   :  { %914 = vmatmul.mubr.bf16.gmra.mxu0 %v129_v21 }
  0x67   :  { %917 = vmatprep.mubr.bf16.mxu0 %v130_v22  ;;  %962 = vmatpush3.bf16.msra.mxu0 %v1049_v35  ;;  %v469_v35 = vld [vmem:[#allocation8 + $0x28] sm:$0xff] }
  0x68   :  { %963 = vmatprep.subr.bf16.mxu0 %v1050_v36 }
  0x6b   :  { %964 = vmatpush3.bf16.msra.mxu0 %v1050_v36  ;;  %v470_v36 = vld [vmem:[#allocation8 + $0x30] sm:$0xff] }
  0x6c   :  { %965 = vmatprep.subr.bf16.mxu0 %v1051_v37 }
  0x6e   :  { %918 = vmatmul.mubr.bf16.gmra.mxu0 %v131_v27 }
  0x6f   :  { %921 = vmatprep.mubr.bf16.mxu0 %v132_v28  ;;  %966 = vmatpush3.bf16.msra.mxu0 %v1051_v37 }
  0x70   :  { %967 = vmatprep.subr.bf16.mxu0 %v1052_v5 }
  0x73   :  { %968 = vmatpush3.bf16.msra.mxu0 %v1052_v5 }
  0x74   :  { %969 = vmatprep.subr.bf16.mxu0 %v1053_v6 }
  0x76   :  { %922 = vmatmul.mubr.bf16.gmra.mxu0 %v133_v31  ;;  %v471_v31 = vld [vmem:[#allocation8 + $0x38] sm:$0xff] }
  0x77   :  { %970 = vmatpush3.bf16.msra.mxu0 %v1053_v6 }
  0x78   :  { %971 = vmatprep.subr.bf16.mxu0 %v1054_v7 }
  0x7b   :  { %972 = vmatpush3.bf16.msra.mxu0 %v1054_v7 }
 0x11e   :  { %v911_v38 = vpop.f32.mrf.mxu0 }
 0x120   :  { %v232_v39 = vpop.f32.mrf.mxu0 }
 0x122   :  { %v912_v40 = vpop.f32.mrf.mxu0 }
 0x123   :  { %v296_v60 = vpack.c.bf16 %v912_v40, %v911_v38 }
 0x124   :  { %v235_v41 = vpop.f32.mrf.mxu0 }
 0x125   :  { %v295_v61 = vpack.c.bf16 %v235_v41, %v232_v39 }
 0x126   :  { %v915_v42 = vpop.f32.mrf.mxu0 }
 0x128   :  { %v248_v43 = vpop.f32.mrf.mxu0 }
 0x12a   :  { %v916_v44 = vpop.f32.mrf.mxu0 }
 0x12b   :  { %v298_v58 = vpack.c.bf16 %v916_v44, %v915_v42 }
 0x12c   :  { %v251_v45 = vpop.f32.mrf.mxu0 }
 0x12d   :  { %v297_v59 = vpack.c.bf16 %v251_v45, %v248_v43 }
 0x12e   :  { %v919_v46 = vpop.f32.mrf.mxu0 }
 0x130   :  { %v264_v47 = vpop.f32.mrf.mxu0 }
 0x132   :  { %v920_v48 = vpop.f32.mrf.mxu0 }
 0x133   :  { %v300_v56 = vpack.c.bf16 %v920_v48, %v919_v46 }
 0x134   :  { %v267_v49 = vpop.f32.mrf.mxu0 }
 0x135   :  { %v299_v57 = vpack.c.bf16 %v267_v49, %v264_v47  ;;  %v475_v49 = vld [vmem:[#allocation8 + $0x58] sm:$0xff] }
 0x136   :  { %v923_v50 = vpop.f32.mrf.mxu0 }
 0x138   :  { %v280_v51 = vpop.f32.mrf.mxu0 }
 0x13a   :  { %v924_v52 = vpop.f32.mrf.mxu0 }
 0x13b   :  { %v302_v53 = vpack.c.bf16 %v924_v52, %v923_v50 }
 0x13c   :  { %v283_v54 = vpop.f32.mrf.mxu0 }
 0x13d   :  { %v301_v55 = vpack.c.bf16 %v283_v54, %v280_v51  ;;  %925 = vmatprep.subr.bf16.mxu1 %v302_v53  ;;  %v472_v51 = vld [vmem:[#allocation8 + $0x40] sm:$0xff]  ;;  %v474_v54 = vld [vmem:[#allocation8 + $0x50] sm:$0xff] }
 0x13e   :  { %926 = vmatpush3.bf16.msra.mxu1 %v302_v53  ;;  %v473_v53 = vld [vmem:[#allocation8 + $0x48] sm:$0xff] }
 0x13f   :  { %927 = vmatprep.subr.bf16.mxu1 %v301_v55 }
 0x142   :  { %928 = vmatpush3.bf16.msra.mxu1 %v301_v55 }
 0x143   :  { %929 = vmatprep.subr.bf16.mxu1 %v300_v56 }
 0x146   :  { %930 = vmatpush3.bf16.msra.mxu1 %v300_v56 }
 0x147   :  { %931 = vmatprep.subr.bf16.mxu1 %v299_v57 }
 0x14a   :  { %932 = vmatpush3.bf16.msra.mxu1 %v299_v57 }
 0x14b   :  { %933 = vmatprep.subr.bf16.mxu1 %v298_v58 }
 0x14e   :  { %934 = vmatpush3.bf16.msra.mxu1 %v298_v58 }
 0x14f   :  { %935 = vmatprep.subr.bf16.mxu1 %v297_v59 }
 0x152   :  { %936 = vmatpush3.bf16.msra.mxu1 %v297_v59 }
 0x153   :  { %937 = vmatprep.subr.bf16.mxu1 %v296_v60 }
 0x156   :  { %938 = vmatpush3.bf16.msra.mxu1 %v296_v60 }
 0x157   :  { %939 = vmatprep.subr.bf16.mxu1 %v295_v61 }
 0x15a   :  { %940 = vmatpush3.bf16.msra.mxu1 %v295_v61 }
 0x15d   :  { %942 = vmatmul.mubr.bf16.vlgmr.msra.gmra.mxu1 %v1261_v62 }
 0x15e   :  { %945 = vmatprep.mubr.bf16.mxu1 %v1263_v63 }
 0x165   :  { %946 = vmatmul.mubr.bf16.gmra.mxu1 %v1267_v0 }
 0x166   :  { %949 = vmatprep.mubr.bf16.mxu1 %v1269_v1 }
 0x16d   :  { %950 = vmatmul.mubr.bf16.gmra.mxu1 %v1273_v2 }
 0x16e   :  { %953 = vmatprep.mubr.bf16.mxu1 %v1275_v3 }
 0x175   :  { %954 = vmatmul.mubr.bf16.gmra.mxu1 %v1279_v4 }
 0x176   :  { %1005 = vmatprep.mubr.bf16.mxu1 %v1258_v32 }
 0x21d   :  { %v943_v8 = vpop.f32.mrf.mxu1 }
 0x21e   :  { %v450_v14 = vmax.f32 %v943_v8, 0.0 }
 0x21f   :  { %v385_v9 = vpop.f32.mrf.mxu1 }
 0x220   :  { %v448_v11 = vmax.f32 %v385_v9, 0.0  ;;  %v482_v24 = vmul.f32 %v466_v18, %v450_v14  ;;  %v477_v14 = vld [vmem:[#allocation8 + $0x68] sm:$0xff] }
 0x221   :  { %v944_v10 = vpop.f32.mrf.mxu1 }
 0x222   :  { %v451_v12 = vmax.f32 %v944_v10, 0.0  ;;  %v480_v22 = vmul.f32 %v464_v15, %v448_v11  ;;  %v479_v10 = vld [vmem:[#allocation8 + $0x78] sm:$0xff]  ;;  %v478_v15 = vld [vmem:[#allocation8 + $0x70] sm:$0xff] }
 0x223   :  { %v388_v16 = vpop.f32.mrf.mxu1 }
 0x224   :  { %v449_v19 = vmax.f32 %v388_v16, 0.0  ;;  %v483_v20 = vmul.f32 %v467_v13, %v451_v12  ;;  %v476_v12 = vld [vmem:[#allocation8 + $0x60] sm:$0xff] }
 0x225   :  { %v947_v21 = vpop.f32.mrf.mxu1 }
 0x226   :  { %v481_v23 = vmul.f32 %v465_v17, %v449_v19  ;;  %v497_v27 = vpack.c.bf16 %v483_v20, %v482_v24  ;;  %v454_v32 = vmax.f32 %v947_v21, 0.0 }
 0x227   :  { %v401_v25 = vpop.f32.mrf.mxu1 }
 0x228   :  { %v496_v26 = vpack.c.bf16 %v481_v23, %v480_v22  ;;  %v452_v29 = vmax.f32 %v401_v25, 0.0  ;;  %v486_v42 = vmul.f32 %v470_v36, %v454_v32 }
 0x229   :  { %v948_v28 = vpop.f32.mrf.mxu1 }
 0x22a   :  { %v455_v30 = vmax.f32 %v948_v28, 0.0  ;;  %973 = vmatprep.mubr.bf16.mxu0 %v496_v26  ;;  %v484_v40 = vmul.f32 %v468_v33, %v452_v29 }
 0x22b   :  { %v404_v34 = vpop.f32.mrf.mxu1  ;;  %974 = vmatmul.mubr.bf16.vlgmr.msra.gmra.mxu0 %v497_v27 }
 0x22c   :  { %v453_v37 = vmax.f32 %v404_v34, 0.0  ;;  %v487_v38 = vmul.f32 %v471_v31, %v455_v30 }
 0x22d   :  { %v951_v39 = vpop.f32.mrf.mxu1 }
 0x22e   :  { %v485_v41 = vmul.f32 %v469_v35, %v453_v37  ;;  %v499_v46 = vpack.c.bf16 %v487_v38, %v486_v42  ;;  %v458_v50 = vmax.f32 %v951_v39, 0.0 }
 0x22f   :  { %v417_v43 = vpop.f32.mrf.mxu1 }
 0x230   :  { %v498_v44 = vpack.c.bf16 %v485_v41, %v484_v40  ;;  %v456_v47 = vmax.f32 %v417_v43, 0.0  ;;  %v490_v60 = vmul.f32 %v474_v54, %v458_v50 }
 0x231   :  { %v952_v45 = vpop.f32.mrf.mxu1 }
 0x232   :  { %v459_v48 = vmax.f32 %v952_v45, 0.0  ;;  %977 = vmatprep.mubr.bf16.mxu0 %v498_v44  ;;  %v488_v58 = vmul.f32 %v472_v51, %v456_v47 }
 0x233   :  { %v420_v52 = vpop.f32.mrf.mxu1  ;;  %978 = vmatmul.mubr.bf16.gmra.mxu0 %v499_v46 }
 0x234   :  { %v457_v55 = vmax.f32 %v420_v52, 0.0  ;;  %v491_v56 = vmul.f32 %v475_v49, %v459_v48 }
 0x235   :  { %v955_v57 = vpop.f32.mrf.mxu1 }
 0x236   :  { %v489_v59 = vmul.f32 %v473_v53, %v457_v55  ;;  %v501_v7 = vpack.c.bf16 %v491_v56, %v490_v60  ;;  %v462_v11 = vmax.f32 %v955_v57, 0.0 }
 0x237   :  { %v433_v61 = vpop.f32.mrf.mxu1 }
 0x238   :  { %v500_v5 = vpack.c.bf16 %v489_v59, %v488_v58  ;;  %v460_v8 = vmax.f32 %v433_v61, 0.0  ;;  %v494_v20 = vmul.f32 %v478_v15, %v462_v11 }
 0x239   :  { %v956_v6 = vpop.f32.mrf.mxu1 }
 0x23a   :  { %v463_v9 = vmax.f32 %v956_v6, 0.0  ;;  %981 = vmatprep.mubr.bf16.mxu0 %v500_v5  ;;  %v492_v18 = vmul.f32 %v476_v12, %v460_v8 }
 0x23b   :  { %v436_v13 = vpop.f32.mrf.mxu1  ;;  %982 = vmatmul.mubr.bf16.gmra.mxu0 %v501_v7 }
 0x23c   :  { %v461_v16 = vmax.f32 %v436_v13, 0.0  ;;  %v495_v17 = vmul.f32 %v479_v10, %v463_v9 }
 0x23e   :  { %v493_v19 = vmul.f32 %v477_v14, %v461_v16  ;;  %v503_v22 = vpack.c.bf16 %v495_v17, %v494_v20 }
 0x240   :  { %v502_v21 = vpack.c.bf16 %v493_v19, %v492_v18 }
 0x242   :  { %985 = vmatprep.mubr.bf16.mxu0 %v502_v21 }
 0x243   :  { %986 = vmatmul.mubr.bf16.gmra.mxu0 %v503_v22 }
 0x2eb   :  { %v975_v23 = vpop.f32.mrf.mxu0 }
 0x2ed   :  { %v602_v24 = vpop.f32.mrf.mxu0 }
 0x2ef   :  { %v976_v25 = vpop.f32.mrf.mxu0 }
 0x2f0   :  { %v666_v45 = vpack.c.bf16 %v976_v25, %v975_v23 }
 0x2f1   :  { %v605_v26 = vpop.f32.mrf.mxu0 }
 0x2f2   :  { %v665_v46 = vpack.c.bf16 %v605_v26, %v602_v24 }
 0x2f3   :  { %v979_v27 = vpop.f32.mrf.mxu0 }
 0x2f5   :  { %v618_v28 = vpop.f32.mrf.mxu0 }
 0x2f7   :  { %v980_v29 = vpop.f32.mrf.mxu0 }
 0x2f8   :  { %v668_v43 = vpack.c.bf16 %v980_v29, %v979_v27 }
 0x2f9   :  { %v621_v30 = vpop.f32.mrf.mxu0 }
 0x2fa   :  { %v667_v44 = vpack.c.bf16 %v621_v30, %v618_v28 }
 0x2fb   :  { %v983_v31 = vpop.f32.mrf.mxu0 }
 0x2fd   :  { %v634_v32 = vpop.f32.mrf.mxu0 }
 0x2ff   :  { %v984_v33 = vpop.f32.mrf.mxu0 }
 0x300   :  { %v670_v41 = vpack.c.bf16 %v984_v33, %v983_v31 }
 0x301   :  { %v637_v34 = vpop.f32.mrf.mxu0 }
 0x302   :  { %v669_v42 = vpack.c.bf16 %v637_v34, %v634_v32 }
 0x303   :  { %v987_v35 = vpop.f32.mrf.mxu0 }
 0x305   :  { %v650_v36 = vpop.f32.mrf.mxu0 }
 0x307   :  { %v988_v37 = vpop.f32.mrf.mxu0 }
 0x308   :  { %v672_v38 = vpack.c.bf16 %v988_v37, %v987_v35 }
 0x309   :  { %v653_v39 = vpop.f32.mrf.mxu0 }
 0x30a   :  { %v671_v40 = vpack.c.bf16 %v653_v39, %v650_v36  ;;  %989 = vmatprep.subr.bf16.mxu1 %v672_v38 }
 0x30b   :  { %990 = vmatpush3.bf16.msra.mxu1 %v672_v38 }
 0x30c   :  { %991 = vmatprep.subr.bf16.mxu1 %v671_v40 }
 0x30f   :  { %992 = vmatpush3.bf16.msra.mxu1 %v671_v40 }
 0x310   :  { %993 = vmatprep.subr.bf16.mxu1 %v670_v41 }
 0x313   :  { %994 = vmatpush3.bf16.msra.mxu1 %v670_v41 }
 0x314   :  { %995 = vmatprep.subr.bf16.mxu1 %v669_v42 }
 0x317   :  { %996 = vmatpush3.bf16.msra.mxu1 %v669_v42 }
 0x318   :  { %997 = vmatprep.subr.bf16.mxu1 %v668_v43 }
 0x31b   :  { %998 = vmatpush3.bf16.msra.mxu1 %v668_v43 }
 0x31c   :  { %999 = vmatprep.subr.bf16.mxu1 %v667_v44 }
 0x31f   :  { %1000 = vmatpush3.bf16.msra.mxu1 %v667_v44 }
 0x320   :  { %1001 = vmatprep.subr.bf16.mxu1 %v666_v45 }
 0x323   :  { %1002 = vmatpush3.bf16.msra.mxu1 %v666_v45 }
 0x324   :  { %1003 = vmatprep.subr.bf16.mxu1 %v665_v46 }
 0x327   :  { %1004 = vmatpush3.bf16.msra.mxu1 %v665_v46 }
 0x32a   :  { %1006 = vmatmul.mubr.bf16.vlgmr.msra.gmra.mxu1 %v1261_v62 }
 0x32b   :  { %1009 = vmatprep.mubr.bf16.mxu1 %v1263_v63 }
 0x332   :  { %1010 = vmatmul.mubr.bf16.gmra.mxu1 %v1267_v0 }
 0x333   :  { %1013 = vmatprep.mubr.bf16.mxu1 %v1269_v1 }
 0x33a   :  { %1014 = vmatmul.mubr.bf16.gmra.mxu1 %v1273_v2 }
 0x33b   :  { %1017 = vmatprep.mubr.bf16.mxu1 %v1275_v3 }
 0x342   :  { %1018 = vmatmul.mubr.bf16.gmra.mxu1 %v1279_v4 }
 0x3ea   :  { %v1007_v47 = vpop.f32.mrf.mxu1 }
 0x3eb   :  { %772 = vst [vmem:[#allocation12 + $0x10] sm:$0xff] %v1007_v47 }
 0x3ec   :  { %v707_v48 = vpop.f32.mrf.mxu1 }
 0x3ed   :  { %770 = vst [vmem:[#allocation12] sm:$0xff] %v707_v48 }
 0x3ee   :  { %v1008_v49 = vpop.f32.mrf.mxu1 }
 0x3ef   :  { %773 = vst [vmem:[#allocation12 + $0x18] sm:$0xff] %v1008_v49 }
 0x3f0   :  { %v710_v50 = vpop.f32.mrf.mxu1 }
 0x3f1   :  { %771 = vst [vmem:[#allocation12 + $0x8] sm:$0xff] %v710_v50 }
 0x3f2   :  { %v1011_v62 = vpop.f32.mrf.mxu1 }
 0x3f3   :  { %776 = vst [vmem:[#allocation12 + $0x30] sm:$0xff] %v1011_v62 }
 0x3f4   :  { %v723_v63 = vpop.f32.mrf.mxu1 }
 0x3f5   :  { %774 = vst [vmem:[#allocation12 + $0x20] sm:$0xff] %v723_v63 }
 0x3f6   :  { %v1012_v0 = vpop.f32.mrf.mxu1 }
 0x3f7   :  { %777 = vst [vmem:[#allocation12 + $0x38] sm:$0xff] %v1012_v0 }
 0x3f8   :  { %v726_v1 = vpop.f32.mrf.mxu1 }
 0x3f9   :  { %775 = vst [vmem:[#allocation12 + $0x28] sm:$0xff] %v726_v1 }
 0x3fa   :  { %v1015_v2 = vpop.f32.mrf.mxu1 }
 0x3fb   :  { %780 = vst [vmem:[#allocation12 + $0x50] sm:$0xff] %v1015_v2 }
 0x3fc   :  { %v739_v3 = vpop.f32.mrf.mxu1 }
 0x3fd   :  { %778 = vst [vmem:[#allocation12 + $0x40] sm:$0xff] %v739_v3 }
 0x3fe   :  { %v1016_v4 = vpop.f32.mrf.mxu1 }
 0x3ff   :  { %781 = vst [vmem:[#allocation12 + $0x58] sm:$0xff] %v1016_v4 }
 0x400   :  { %v742_v51 = vpop.f32.mrf.mxu1 }
 0x401   :  { %779 = vst [vmem:[#allocation12 + $0x48] sm:$0xff] %v742_v51 }
 0x402   :  { %v1019_v52 = vpop.f32.mrf.mxu1 }
 0x403   :  { %784 = vst [vmem:[#allocation12 + $0x70] sm:$0xff] %v1019_v52 }
 0x404   :  { %v755_v53 = vpop.f32.mrf.mxu1 }
 0x405   :  { %782 = vst [vmem:[#allocation12 + $0x60] sm:$0xff] %v755_v53 }
 0x406   :  { %v1020_v54 = vpop.f32.mrf.mxu1 }
 0x407   :  { %785 = vst [vmem:[#allocation12 + $0x78] sm:$0xff] %v1020_v54 }
 0x408   :  { %v758_v55 = vpop.f32.mrf.mxu1 }
 0x409   :  { %783 = vst [vmem:[#allocation12 + $0x68] sm:$0xff] %v758_v55 }
 0x40a   :  { %1166 = shalt.err (!%p1163_p1)
}
 0x40b   :  { %797 = dma.vmem_to_hbm [thread:$0]  %s792_s5, 2048, %s1302_s6, [#allocation5], %s1188_s10, %s1188_s10, %s1189_s11  }
 0x40c   :  { %1181 = dma.done.wait [#allocation5], 2048  }
 0x40d   :  { %1182 = vsyncadd [#allocation5], 4294965248 }
 0x40e   :  { %801 = vsyncpa [#allocation4], 1 }
 0x40f   :  { %802 = vsyncpa [#allocation7], 1 }
 0x410   :  { %803 = vsyncpa [#allocation10], 1 }
 0x411   :  { %804 = vsyncpa [#allocation5], 1 }

</bundles_post_ra>
